<compile_context>
chip_gen: v7x
topology: tpu7x:2x2x1
jax: 0.10.0
libtpu: 0.0.40
codegen_flags: <defaults>
</compile_context>

<pallas_src>
import functools

import jax
import jax.numpy as jnp
from jax import lax
from jax.experimental import pallas as pl
from jax.experimental.pallas import tpu as pltpu

_MIB = 1024 * 1024
_ROW_ALIGN = 16  # multiple of 16 sublanes -> safe for f32 and bf16 packing


def _round_up(x, m):
    return ((x + m - 1) // m) * m


def _physical_vmem_bytes():
    try:
        return int(pltpu.get_tpu_info().vmem_capacity_bytes)
    except Exception:
        return 64 * _MIB  # conservative fallback (v7x per-core VMEM)


def _use_mxu_reduce(in_dtype):
    # bf16 inputs: keep multiplies packed in bf16 and do the axis=-1 reductions
    # on the MXU (ones-vector matmul, f32 accumulation).  Gated on dtype only:
    # on v5e it is no worse than the upcast path, on v6e/v7x it removes the
    # VALU bottleneck.
    return jnp.dtype(in_dtype) == jnp.bfloat16


def _per_row_vmem_bytes(d, in_dtype):
    """Estimated VMEM bytes per batch row: double-buffered inputs + y +
    in-kernel intermediates (products / upcasts)."""
    itemsize = jnp.dtype(in_dtype).itemsize
    d_lanes = _round_up(max(int(d), 1), 128)       # lane padding in VMEM
    inputs = 2 * 2 * d_lanes * itemsize            # x1 + x2, 2 buffers each
    y = 2 * 128 * 4                                # (rows, 1) f32, lane-padded
    if _use_mxu_reduce(in_dtype):
        interm = 3 * d_lanes * itemsize            # three bf16 product arrays
    else:
        interm = 5 * d_lanes * 4                   # 2 f32 upcasts + 3 products
    return inputs + y + interm


def _auto_block_rows(d, in_dtype):
    """Largest batch tile that fits a generation-aware VMEM budget."""
    per_row = _per_row_vmem_bytes(d, in_dtype)
    # ~1/3 of physical VMEM for the pipelined blocks + live intermediates:
    #   v5e/v6e (128 MiB) -> 40 MiB budget (capped), v7x (64 MiB) -> ~21 MiB.
    budget = min(_physical_vmem_bytes() // 3, 40 * _MIB)
    rows = (budget // per_row) // _ROW_ALIGN * _ROW_ALIGN
    return max(_ROW_ALIGN, rows)


def _cosine_embedding_loss_kernel(x1_ref, x2_ref, y_ref, out_ref, *,
                                  margin, n_rows, block_rows, d, mxu_reduce):
    y = y_ref[...]                                 # (bm, 1) f32 in {+1, -1}

    if mxu_reduce:
        # bf16 path: packed bf16 multiplies, reductions on the MXU (f32 acc).
        x1 = x1_ref[...]
        x2 = x2_ref[...]
        ones = jnp.ones((d, 1), dtype=x1.dtype)
        dot = jnp.dot(x1 * x2, ones, preferred_element_type=jnp.float32)
        n1 = jnp.dot(x1 * x1, ones, preferred_element_type=jnp.float32)
        n2 = jnp.dot(x2 * x2, ones, preferred_element_type=jnp.float32)
    else:
        # f32 path (and v5e, which is strictly memory-bound here).
        x1 = x1_ref[...].astype(jnp.float32)       # (bm, D)
        x2 = x2_ref[...].astype(jnp.float32)
        dot = jnp.sum(x1 * x2, axis=-1, keepdims=True)   # (bm, 1)
        n1 = jnp.sum(x1 * x1, axis=-1, keepdims=True)
        n2 = jnp.sum(x2 * x2, axis=-1, keepdims=True)

    # cos = dot / (max(||x1||, eps) * max(||x2||, eps)), eps = 1e-8 (PyTorch).
    # Clamping each squared norm at eps^2 + two EUP rsqrts avoids f32 overflow
    # of n1*n2 and matches per-norm eps semantics.
    eps_sq = jnp.float32(1e-16)
    inv_denom = (lax.rsqrt(jnp.maximum(n1, eps_sq)) *
                 lax.rsqrt(jnp.maximum(n2, eps_sq)))
    cos = dot * inv_denom

    # loss_i = 1 - cos           if y ==  1
    #        = max(0, cos - m)   if y == -1
    per_sample = jnp.where(
        y > 0.0, 1.0 - cos,
        jnp.maximum(cos - jnp.float32(margin), 0.0))

    # Ragged tail: mask by GLOBAL row index (n_rows is static); the partial
    # last block's out-of-bounds rows hold unspecified data (possibly NaN),
    # the select keeps it out of the block sum.
    if n_rows % block_rows != 0:
        row = (pl.program_id(0) * block_rows
               + lax.broadcasted_iota(jnp.int32, (block_rows, 1), 0))
        per_sample = jnp.where(row < n_rows, per_sample, 0.0)

    # Lane-dense (1, 1, 128) partial-sum output (unmasked vector store).
    out_ref[...] = jnp.zeros_like(out_ref) + jnp.sum(per_sample)


def cosine_embedding_loss(input1, input2, target, margin=0.0,
                          size_average=True, block_rows=None):
    """Pallas implementation of F.cosine_embedding_loss (forward).

    input1, input2: (N, D); target: (N,) with values in {+1, -1}.
    Returns a scalar float32.
    """
    n, d = input1.shape
    assert input2.shape == (n, d)
    assert target.shape == (n,)

    if block_rows is None:
        block_rows = _auto_block_rows(d, input1.dtype)
    block_rows = _round_up(max(_ROW_ALIGN, int(block_rows)), _ROW_ALIGN)
    block_rows = min(block_rows, _round_up(n, _ROW_ALIGN))
    # Guarantee >= 2 parallel blocks when the batch allows it so v7x can shard
    # the grid across its 2 TensorCores (extra grid step is ~0.35 us on 1-TC
    # chips -> negligible).
    if n > _ROW_ALIGN and pl.cdiv(n, block_rows) < 2:
        block_rows = _round_up(pl.cdiv(n, 2), _ROW_ALIGN)
    num_blocks = pl.cdiv(n, block_rows)

    # Target as a lane-thin (N, 1) f32 column; tiny vs. x1/x2 traffic.
    y2d = target.reshape(n, 1).astype(jnp.float32)

    in_itemsize = jnp.dtype(input1.dtype).itemsize
    footprint = _per_row_vmem_bytes(d, input1.dtype) * block_rows
    vmem_limit = int(min(_physical_vmem_bytes() * 3 // 4,
                         max(32 * _MIB, footprint + 12 * _MIB)))

    cost = pl.CostEstimate(
        flops=int(6 * n * d + 10 * n),
        transcendentals=int(2 * n),
        bytes_accessed=int(2 * n * d * in_itemsize + n * 4
                           + num_blocks * 128 * 4),
    )

    kernel = functools.partial(
        _cosine_embedding_loss_kernel,
        margin=float(margin), n_rows=int(n), block_rows=int(block_rows),
        d=int(d), mxu_reduce=_use_mxu_reduce(input1.dtype))

    partials = pl.pallas_call(
        kernel,
        out_shape=jax.ShapeDtypeStruct((num_blocks, 1, 128), jnp.float32),
        grid_spec=pltpu.PrefetchScalarGridSpec(
            num_scalar_prefetch=0,
            grid=(num_blocks,),
            in_specs=[
                pl.BlockSpec((block_rows, d), lambda i: (i, 0)),
                pl.BlockSpec((block_rows, d), lambda i: (i, 0)),
                pl.BlockSpec((block_rows, 1), lambda i: (i, 0)),
            ],
            out_specs=pl.BlockSpec((1, 1, 128), lambda i: (i, 0, 0)),
        ),
        compiler_params=pltpu.CompilerParams(
            dimension_semantics=("parallel",),   # lets v7x shard blocks on 2 TCs
            vmem_limit_bytes=vmem_limit,
        ),
        cost_estimate=cost,
    )(input1, input2, y2d)

    total = jnp.sum(partials[:, 0, 0])
    if size_average:
        total = total / jnp.float32(n)
    return total


def _reference(x1, x2, y, margin=0.0, size_average=True):
    x1 = x1.astype(jnp.float32)
    x2 = x2.astype(jnp.float32)
    dot = jnp.sum(x1 * x2, axis=-1)
    n1 = jnp.maximum(jnp.linalg.norm(x1, axis=-1), 1e-8)
    n2 = jnp.maximum(jnp.linalg.norm(x2, axis=-1), 1e-8)
    cos = dot / (n1 * n2)
    loss = jnp.where(y > 0, 1.0 - cos, jnp.maximum(cos - margin, 0.0))
    return jnp.mean(loss) if size_average else jnp.sum(loss)


if __name__ == "__main__":
    key = jax.random.PRNGKey(0)
    keys = jax.random.split(key, 9)

    # Case 1: small ragged batch -> single partial block + in-kernel tail
    # masking, f32 path.
    N, D = 10, 32
    x1 = jax.random.normal(keys[0], (N, D), dtype=jnp.float32)
    x2 = jax.random.normal(keys[1], (N, D), dtype=jnp.float32)
    y = jnp.where(jax.random.bernoulli(keys[2], 0.5, (N,)), 1, -1).astype(jnp.int32)
    loss = jax.block_until_ready(
        cosine_embedding_loss(x1, x2, y, margin=0.2, size_average=True))
    ref = _reference(x1, x2, y, margin=0.2, size_average=True)
    assert jnp.allclose(loss, ref, atol=1e-5, rtol=1e-5), (loss, ref)

    # Case 2: multi-block "parallel" grid, bf16 inputs streamed as bf16
    # (MXU-ones reduction path), size_average=False.
    N2, D2 = 64, 48
    a1 = jax.random.normal(keys[3], (N2, D2), dtype=jnp.float32).astype(jnp.bfloat16)
    a2 = jax.random.normal(keys[4], (N2, D2), dtype=jnp.float32).astype(jnp.bfloat16)
    y2 = jnp.where(jax.random.bernoulli(keys[5], 0.5, (N2,)), 1, -1).astype(jnp.int32)
    loss2 = jax.block_until_ready(
        cosine_embedding_loss(a1, a2, y2, margin=0.0,
                              size_average=False, block_rows=16))
    ref2 = _reference(a1, a2, y2, margin=0.0, size_average=False)
    assert jnp.allclose(loss2, ref2, atol=1e-3, rtol=1e-3), (loss2, ref2)

    # Case 3: multi-block grid with a ragged tail (no wrapper-side padding), f32.
    N3, D3 = 50, 256
    b1 = jax.random.normal(keys[6], (N3, D3), dtype=jnp.float32)
    b2 = jax.random.normal(keys[7], (N3, D3), dtype=jnp.float32)
    y3 = jnp.where(jax.random.bernoulli(keys[8], 0.5, (N3,)), 1, -1).astype(jnp.int32)
    loss3 = jax.block_until_ready(
        cosine_embedding_loss(b1, b2, y3, margin=0.1,
                              size_average=True, block_rows=16))
    ref3 = _reference(b1, b2, y3, margin=0.1, size_average=True)
    assert jnp.allclose(loss3, ref3, atol=1e-5, rtol=1e-5), (loss3, ref3)

    print("KERNEL_OK")
</pallas_src>

<mosaic_0001>
module attributes {stable_mosaic.version = 11 : i64} {
  func.func @_cosine_embedding_loss_kernel(%arg0: i32, %arg1: memref<16x32xf32, #tpu.memory_space<vmem>>, %arg2: memref<16x32xf32, #tpu.memory_space<vmem>>, %arg3: memref<16x1xf32, #tpu.memory_space<vmem>>, %arg4: memref<1x1x128xf32, #tpu.memory_space<vmem>>) attributes {dimension_semantics = [#tpu.dimension_semantics<parallel>], iteration_bounds = array<i64: 1>, scalar_prefetch = 0 : i64, scratch_operands = 0 : i64, tpu.core_type = #tpu.core_type<tc>, window_params = [{transform_indices = @transform_0, window_bounds = array<i64: 16, 32>}, {transform_indices = @transform_1, window_bounds = array<i64: 16, 32>}, {transform_indices = @transform_2, window_bounds = array<i64: 16, 1>}, {transform_indices = @transform_3, window_bounds = array<i64: 1, 1, 128>}]} {
    %c0 = arith.constant 0 : index
    %c0_0 = arith.constant 0 : index
    %0 = vector.load %arg3[%c0, %c0_0] : memref<16x1xf32, #tpu.memory_space<vmem>>, vector<16x1xf32>
    %c0_1 = arith.constant 0 : index
    %c0_2 = arith.constant 0 : index
    %1 = vector.load %arg1[%c0_1, %c0_2] : memref<16x32xf32, #tpu.memory_space<vmem>>, vector<16x32xf32>
    %c0_3 = arith.constant 0 : index
    %c0_4 = arith.constant 0 : index
    %2 = vector.load %arg2[%c0_3, %c0_4] : memref<16x32xf32, #tpu.memory_space<vmem>>, vector<16x32xf32>
    %3 = arith.mulf %1, %2 : vector<16x32xf32>
    %cst = arith.constant dense<0.000000e+00> : vector<16xf32>
    %4 = vector.multi_reduction <add>, %3, %cst [1] : vector<16x32xf32> to vector<16xf32>
    %5 = vector.shape_cast %4 : vector<16xf32> to vector<16x1xf32>
    %6 = arith.mulf %1, %1 : vector<16x32xf32>
    %cst_5 = arith.constant dense<0.000000e+00> : vector<16xf32>
    %7 = vector.multi_reduction <add>, %6, %cst_5 [1] : vector<16x32xf32> to vector<16xf32>
    %8 = vector.shape_cast %7 : vector<16xf32> to vector<16x1xf32>
    %9 = arith.mulf %2, %2 : vector<16x32xf32>
    %cst_6 = arith.constant dense<0.000000e+00> : vector<16xf32>
    %10 = vector.multi_reduction <add>, %9, %cst_6 [1] : vector<16x32xf32> to vector<16xf32>
    %11 = vector.shape_cast %10 : vector<16xf32> to vector<16x1xf32>
    %cst_7 = arith.constant 1.000000e-16 : f32
    %12 = vector.broadcast %cst_7 : f32 to vector<16x1xf32>
    %13 = arith.maximumf %8, %12 : vector<16x1xf32>
    %14 = math.rsqrt %13 : vector<16x1xf32>
    %cst_8 = arith.constant 1.000000e-16 : f32
    %15 = vector.broadcast %cst_8 : f32 to vector<16x1xf32>
    %16 = arith.maximumf %11, %15 : vector<16x1xf32>
    %17 = math.rsqrt %16 : vector<16x1xf32>
    %18 = arith.mulf %14, %17 : vector<16x1xf32>
    %19 = arith.mulf %5, %18 : vector<16x1xf32>
    %cst_9 = arith.constant 0.000000e+00 : f32
    %20 = vector.broadcast %cst_9 : f32 to vector<16x1xf32>
    %21 = arith.cmpf ogt, %0, %20 : vector<16x1xf32>
    %cst_10 = arith.constant 1.000000e+00 : f32
    %22 = vector.broadcast %cst_10 : f32 to vector<16x1xf32>
    %23 = arith.subf %22, %19 : vector<16x1xf32>
    %cst_11 = arith.constant 2.000000e-01 : f32
    %24 = vector.broadcast %cst_11 : f32 to vector<16x1xf32>
    %25 = arith.subf %19, %24 : vector<16x1xf32>
    %cst_12 = arith.constant 0.000000e+00 : f32
    %26 = vector.broadcast %cst_12 : f32 to vector<16x1xf32>
    %27 = arith.maximumf %25, %26 : vector<16x1xf32>
    %28 = arith.select %21, %23, %27 : vector<16x1xi1>, vector<16x1xf32>
    %c16_i32 = arith.constant 16 : i32
    %29 = arith.muli %arg0, %c16_i32 : i32
    %30 = tpu.iota {dimensions = array<i32: 0>} : vector<16x1xi32>
    %31 = vector.broadcast %29 : i32 to vector<16x1xi32>
    %32 = arith.addi %31, %30 : vector<16x1xi32>
    %c10_i32 = arith.constant 10 : i32
    %33 = vector.broadcast %c10_i32 : i32 to vector<16x1xi32>
    %34 = arith.cmpi slt, %32, %33 : vector<16x1xi32>
    %cst_13 = arith.constant 0.000000e+00 : f32
    %35 = vector.broadcast %cst_13 : f32 to vector<16x1xf32>
    %36 = arith.select %34, %28, %35 : vector<16x1xi1>, vector<16x1xf32>
    %cst_14 = arith.constant 0.000000e+00 : f32
    %37 = vector.broadcast %cst_14 : f32 to vector<1x1x128xf32>
    %38 = vector.shape_cast %36 : vector<16x1xf32> to vector<1x16x1xf32>
    %cst_15 = arith.constant dense<0.000000e+00> : vector<1xf32>
    %39 = vector.multi_reduction <add>, %38, %cst_15 [1, 2] : vector<1x16x1xf32> to vector<1xf32>
    %40 = vector.shape_cast %39 : vector<1xf32> to vector<1x1x1xf32>
    %41 = vector.extract %40[0, 0, 0] : f32 from vector<1x1x1xf32>
    %42 = vector.broadcast %41 : f32 to vector<1x1x128xf32>
    %43 = arith.addf %37, %42 : vector<1x1x128xf32>
    %c0_16 = arith.constant 0 : index
    %c0_17 = arith.constant 0 : index
    %c0_18 = arith.constant 0 : index
    %44 = vector.load %arg4[%c0_16, %c0_17, %c0_18] : memref<1x1x128xf32, #tpu.memory_space<vmem>>, vector<1x1x128xf32>
    tpu.vector_store %arg4[%c0_16, %c0_17, %c0_18], %43 {strides = array<i32>} : memref<1x1x128xf32, #tpu.memory_space<vmem>>, vector<1x1x128xf32>,
    return
  }
  func.func @transform_0(%arg0: i32) -> (i32, i32) {
    %c0_i32 = arith.constant 0 : i32
    %c0_i32_0 = arith.constant 0 : i32
    return %arg0, %c0_i32 : i32, i32
  }
  func.func @transform_1(%arg0: i32) -> (i32, i32) {
    %c0_i32 = arith.constant 0 : i32
    %c0_i32_0 = arith.constant 0 : i32
    return %arg0, %c0_i32 : i32, i32
  }
  func.func @transform_2(%arg0: i32) -> (i32, i32) {
    %c0_i32 = arith.constant 0 : i32
    %c0_i32_0 = arith.constant 0 : i32
    return %arg0, %c0_i32 : i32, i32
  }
  func.func @transform_3(%arg0: i32) -> (i32, i32, i32) {
    %c0_i32 = arith.constant 0 : i32
    %c0_i32_0 = arith.constant 0 : i32
    %c0_i32_1 = arith.constant 0 : i32
    return %arg0, %c0_i32, %c0_i32_0 : i32, i32, i32
  }
}

</mosaic_0001>

<bundles_post_ra>
// kernel: tpu_custom_call.1
= control target key start
LH: loop header
LB: loop body
LE: loop exit
PB: predicated region body
PF: predicated region fallthrough
CT: control target
= control target key end

     0   :  { %8 = vsyncpa [#allocation3], 0  ;;  %s254_s0 = inlined_call_operand.vmem [shape: f32[10,32], index: 0, kind: input, shape index: {}]   ;;  %s255_s1 = inlined_call_operand.hbm [shape: f32[10,32], index: 1, kind: input, shape index: {}]   ;;  %s256_s2 = inlined_call_operand.vmem [shape: f32[10,1], index: 2, kind: input, shape index: {}]   ;;  %s257_s3 = inlined_call_operand.hbm [shape: f32[1,1,128], index: 3, kind: output, shape index: {}]  }
   0x1   :  { %9 = vsyncpa [#allocation4], 0  ;;  %s188_s12 = smov [#allocation2]   ;;  %s140_s16 = scalar_lea.hbm %s255_s1, 256 }
   0x2   :  { %s17_s13 = sshll.u32 %s188_s12, 4  ;;  %p141_p0 = scmp.ne.s32.totalorder %s255_s1, %s140_s16  ;;  %s18_s13 = int_to_ptr.vmem [resolvable:$true] %s17_s13 }
   0x3   :  { %p144_p1 = scmp.lt.u32.totalorder %s140_s16, %s255_s1 }
   0x5   :  { %p146_p2 = pnand %p144_p1, %p141_p0 }
   0x7   :  { %149 = shalt.err (!%p146_p2)
}
   0x8   :  { %s150_s21 = scalar_lea.vmem %s18_s13, 256  ;;  %p155_p4 = scmp.lt.s32.totalorder %s18_s13, %s18_s13 }
   0x9   :  { %p151_p3 = scmp.ne.s32.totalorder %s18_s13, %s150_s21  ;;  %p156_p5 = scmp.lt.s32.totalorder %s150_s21, %s150_s21 }
   0xb   :  { %p157_p6 = por %p156_p5, %p155_p4 }
   0xd   :  { %p158_p7 = pnand %p157_p6, %p151_p3 }
   0xf   :  { %161 = shalt.err (!%p158_p7)
}
  0x10   :  { %s189_s22 = smov 128   ;;  %s190_s23 = smov 8  }
  0x11   :  { %23 = dma.hbm_to_vmem [thread:$0]  %s255_s1, 256, %s18_s13, [#allocation3], %s189_s22, %s189_s22, %s190_s23  }
  0x12   :  { %184 = dma.done.wait [#allocation3], 256  }
  0x13   :  { %185 = vsyncadd [#allocation3], 4294967040  ;;  %v32_v0 = vld [vmem:[%s254_s0 + $0x8] sm:$0xff]  ;;  %vm37_vm0 = vcmask 261120   ;;  %v31_v1 = vld [vmem:[%s254_s0] sm:$0xff]  ;;  %v83_v24 = vlaneseq  ;;  %vm93_vm4 = vcmask 7168  }
  0x14   :  { %v34_v2 = vld [vmem:[#allocation2 + $0x8] sm:$0xff]  ;;  %v45_v3 = vmul.f32 %v32_v0, %v32_v0  ;;  %v44_v4 = vmul.f32 %v31_v1, %v31_v1  ;;  %v33_v6 = vld [vmem:[#allocation2] sm:$0xff] }
  0x15   :  { %v53_v5 = vmul.f32 %v34_v2, %v34_v2  ;;  %v52_v7 = vmul.f32 %v33_v6, %v33_v6  ;;  %v36_v12 = vmul.f32 %v34_v2, %v32_v0  ;;  %v35_v13 = vmul.f32 %v33_v6, %v31_v1  ;;  %v30_v35 = vld [vmem:[%s256_s2 + $0x8] sm:$0xff]  ;;  %v29_v38 = vld [vmem:[%s256_s2] sm:$0xff]  ;;  %s191_s2 = smov [#allocation5]  }
  0x16   :  { %v49_v8 = vsel %vm37_vm0, %v45_v3, 0.0  ;;  %v46_v9 = vsel %vm37_vm0, %v44_v4, 0.0  ;;  %v84_v27 = vshrl.u32 %v83_v24, 7  ;;  %vm73_vm1 = vcmp.gt.f32.partialorder %v30_v35, 0.0  ;;  %s115_s5 = sshll.u32 %s191_s2, 4  ;;  %s116_s5 = int_to_ptr.vmem [resolvable:$true] %s115_s5 }
  0x17   :  { %50 = vadd.xlane.f32.xlu0 %v49_v8  ;;  %47 = vadd.xlane.f32.xlu1 %v46_v9  ;;  %v57_v10 = vsel %vm37_vm0, %v53_v5, 0.0  ;;  %v54_v11 = vsel %vm37_vm0, %v52_v7, 0.0  ;;  %v41_v14 = vsel %vm37_vm0, %v36_v12, 0.0  ;;  %v38_v15 = vsel %vm37_vm0, %v35_v13, 0.0  ;;  %s162_s7 = scalar_lea.vmem %s116_s5, 16  ;;  %s166_s8 = scalar_lea.vmem %s116_s5, 32 }
  0x18   :  { %v85_v36 = vadd.s32 8, %v84_v27  ;;  %vm72_vm2 = vcmp.gt.f32.partialorder %v29_v38, 0.0  ;;  %p163_p8 = scmp.ne.s32.totalorder %s116_s5, %s162_s7  ;;  %p167_p9 = scmp.lt.s32.totalorder %s116_s5, %s116_s5 }
  0x19   :  { %p168_p10 = scmp.lt.s32.totalorder %s166_s8, %s162_s7 }
  0x1a   :  { %vm90_vm3 = vcmp.lt.s32.totalorder %v85_v36, 10 }
  0x1b   :  { %58 = vadd.xlane.f32.xlu0 %v57_v10  ;;  %55 = vadd.xlane.f32.xlu1 %v54_v11  ;;  %p169_p11 = por %p168_p10, %p167_p9 }
  0x1d   :  { %p170_p12 = pnand %p169_p11, %p163_p8 }
  0x1f   :  { %42 = vadd.xlane.f32.xlu0 %v41_v14  ;;  %39 = vadd.xlane.f32.xlu1 %v38_v15 }
  0xa4   :  { %v51_v16 = vpop.xlane.xlu0 %50  ;;  %v48_v17 = vpop.xlane.xlu1 %47 }
  0xa5   :  { %v61_v18 = vmax.f32 %v51_v16, 1e-16  ;;  %v60_v19 = vmax.f32 %v48_v17, 1e-16 }
  0xa7   :  { %132 = vrsqrt.f32 %v61_v18 }
  0xa8   :  { %v59_v20 = vpop.xlane.xlu0 %58  ;;  %v56_v21 = vpop.xlane.xlu1 %55  ;;  %134 = vrsqrt.f32 %v60_v19 }
  0xa9   :  { %v65_v22 = vmax.f32 %v59_v20, 1e-16  ;;  %v64_v23 = vmax.f32 %v56_v21, 1e-16 }
  0xab   :  { %136 = vrsqrt.f32 %v65_v22 }
  0xac   :  { %138 = vrsqrt.f32 %v64_v23  ;;  %v43_v29 = vpop.xlane.xlu0 %42  ;;  %v40_v32 = vpop.xlane.xlu1 %39 }
  0xb1   :  { %v133_v25 = vpop.eup %132 }
  0xb2   :  { %v135_v26 = vpop.eup %134 }
  0xb5   :  { %v137_v28 = vpop.eup %136 }
  0xb6   :  { %v139_v30 = vpop.eup %138  ;;  %v69_v31 = vmul.f32 %v137_v28, %v133_v25 }
  0xb7   :  { %v68_v33 = vmul.f32 %v139_v30, %v135_v26 }
  0xb8   :  { %v71_v34 = vmul.f32 %v69_v31, %v43_v29 }
  0xb9   :  { %v70_v37 = vmul.f32 %v68_v33, %v40_v32 }
  0xba   :  { %v125_v39 = vadd.f32 -0.2, %v71_v34  ;;  %v75_v41 = vsub.f32 1.0, %v71_v34 }
  0xbb   :  { %v124_v40 = vadd.f32 -0.2, %v70_v37  ;;  %v74_v43 = vsub.f32 1.0, %v70_v37 }
  0xbc   :  { %v79_v42 = vmax.f32 %v125_v39, 0.0 }
  0xbd   :  { %v78_v44 = vmax.f32 %v124_v40, 0.0 }
  0xbe   :  { %v81_v45 = vsel %vm73_vm1, %v75_v41, %v79_v42 }
  0xbf   :  { %v80_v46 = vsel %vm72_vm2, %v74_v43, %v78_v44  ;;  %v92_v47 = vsel %vm90_vm3, %v81_v45, 0.0 }
  0xc0   :  { %v94_v48 = vsel %vm93_vm4, %v80_v46, 0.0  ;;  %v95_v49 = vsel %vm93_vm4, %v92_v47, 0.0 }
  0xc1   :  { %v96_v50 = vadd.f32 %v95_v49, %v94_v48 }
  0xc3   :  { %97 = vadd.xlane.f32.xlu0 %v96_v50 }
 0x150   :  { %v98_v51 = vpop.xlane.xlu0 %97 }
 0x151   :  { %v99_v52 = vrot.slane %v98_v51, 4 }
 0x153   :  { %v100_v53 = vadd.f32 %v99_v52, %v98_v51 }
 0x155   :  { %v101_v54 = vrot.slane %v100_v53, 2 }
 0x157   :  { %v102_v55 = vadd.f32 %v101_v54, %v100_v53 }
 0x159   :  { %v103_v56 = vrot.slane %v102_v55, 1 }
 0x15b   :  { %v104_v57 = vadd.f32 %v103_v56, %v102_v55 }
 0x15d   :  { %126 = vpush %v104_v57 }
 0x18e   :  { %s127_s6 = spop %126 }
 0x18f   :  { %v106_v58 = vstv %s127_s6 }
 0x190   :  { %108 = vst [vmem:[#allocation5] sm:$0x1] %v106_v58 }
 0x191   :  { %173 = shalt.err (!%p170_p12)
}
 0x192   :  { %s174_s11 = scalar_lea.hbm %s257_s3, 16 }
 0x193   :  { %p175_p13 = scmp.ne.s32.totalorder %s257_s3, %s174_s11  ;;  %p178_p0 = scmp.lt.u32.totalorder %s174_s11, %s257_s3 }
 0x195   :  { %p180_p1 = pnand %p178_p0, %p175_p13 }
 0x197   :  { %183 = shalt.err (!%p180_p1)
}
 0x198   :  { %118 = dma.vmem_to_hbm [thread:$0]  %s116_s5, 16, %s257_s3, [#allocation4]  }
 0x199   :  { %186 = dma.done.wait [#allocation4], 16  }
 0x19a   :  { %187 = vsyncadd [#allocation4], 4294967280 }
 0x19b   :  { %122 = vsyncpa [#allocation3], 1 }
 0x19c   :  { %123 = vsyncpa [#allocation4], 1 }

</bundles_post_ra>
